<compile_context>
chip_gen: v6e
topology: v6e:2x2x1
jax: 0.10.0
libtpu: 0.0.40
codegen_flags: <defaults>
</compile_context>

<pallas_src>
import math

import jax
import jax.numpy as jnp
from jax.experimental import pallas as pl
from jax.experimental.pallas import tpu as pltpu


def _bias_add_kernel(x_ref, b_ref, o_ref):
    # x_ref: (TB, L) activation tile; b_ref: (1, L) resident bias row.
    # Pure VPU broadcast-add; loads/stores dominate, so this kernel is
    # HBM-bandwidth bound on all generations.
    o_ref[...] = (x_ref[...] + b_ref[...]).astype(o_ref.dtype)


def _lane_width(feat: int) -> tuple[int, int]:
    """Smallest lane-dense packed width: L = lcm(feat, 128).

    Returns (L, pack) where pack = L // feat.  pack == 1 means "keep the
    natural (rows, feat) layout" (feat already lane-dense, or the lcm is too
    large to be worth packing).
    """
    if feat % 128 == 0:
        return feat, 1                          # already lane-dense
    L = feat * 128 // math.gcd(feat, 128)       # lcm(feat, 128); 128 for feat=4
    if L > 4096:                                # pathological feat: don't pack
        return feat, 1                          # (full-feat blocks still legal)
    return L, L // feat


_TILE_BUDGET = 8 * 1024 * 1024      # bytes per tile -> ~32 MiB live (2x in + 2x out)
_MIN_SPLIT_BYTES = 2 * 1024 * 1024  # above this, force a multi-step grid
_VMEM_LIMIT = 48 * 1024 * 1024      # < v7x's 64 MiB VMEM; raises v5e's 16 MiB default


def _choose_tb(rows: int, lanes: int, itemsize: int) -> int:
    """Rows per tile: big enough for DMA efficiency, small enough for VMEM."""
    sub = max(8, 32 // itemsize)                # 8 (f32), 16 (bf16), 32 (int8)
    tb = max(sub, (_TILE_BUDGET // (lanes * itemsize)) // sub * sub)
    total_bytes = rows * lanes * itemsize
    if total_bytes > _MIN_SPLIT_BYTES:
        # Keep >= ~4 grid steps so the DMA pipeline overlaps writeback with the
        # next fetch and v7x's two TensorCores both get work.
        cap = max(sub, (rows // 4) // sub * sub)
        tb = min(tb, cap)
    if tb >= rows:
        return rows                             # single full block: any size ok
    return tb


def bias_layer_forward(x: jax.Array, bias: jax.Array) -> jax.Array:
    """Computes x + bias (bias broadcast over leading dims) with a Pallas kernel."""
    orig_shape = x.shape
    feat = bias.shape[-1]
    assert orig_shape[-1] == feat, "last dim of x must equal bias size"

    dtype = x.dtype
    itemsize = jnp.dtype(dtype).itemsize
    b = bias.astype(dtype)                      # match activation dtype

    n = int(math.prod(orig_shape))
    lanes, pack = _lane_width(feat)
    if pack > 1 and n % lanes == 0:
        # Copy-free lane-dense repack: reshape is a pure bitcast (no pad, no
        # slice), bias is tiled to the packed width (period preserved since
        # lanes is a multiple of feat).
        rows = n // lanes
        x2d = x.reshape(rows, lanes)
        b_row = jnp.tile(b, pack).reshape(1, lanes)
    else:
        # Natural layout: (rows, feat).  Ragged sizes stay here so we never
        # materialize a padded copy of x or a sliced copy of the output.
        # Block last dim == full feat is legal even when feat % 128 != 0.
        lanes = feat
        rows = max(1, n // feat)
        x2d = x.reshape(rows, feat)
        b_row = b.reshape(1, feat)

    tb = _choose_tb(rows, lanes, itemsize)
    grid = (pl.cdiv(rows, tb),)

    out = pl.pallas_call(
        _bias_add_kernel,
        out_shape=jax.ShapeDtypeStruct((rows, lanes), dtype),
        grid_spec=pl.GridSpec(
            grid=grid,
            in_specs=[
                pl.BlockSpec((tb, lanes), lambda i: (i, 0)),   # streamed x tile
                pl.BlockSpec((1, lanes), lambda i: (0, 0)),    # resident bias
            ],
            out_specs=pl.BlockSpec((tb, lanes), lambda i: (i, 0)),
        ),
        compiler_params=pltpu.CompilerParams(
            # Row tiles are independent -> shard across v7x's 2 TensorCores;
            # harmless on single-TC v5e/v6e.
            dimension_semantics=("parallel",),
            vmem_limit_bytes=_VMEM_LIMIT,
        ),
        cost_estimate=pl.CostEstimate(
            flops=rows * lanes,
            transcendentals=0,
            bytes_accessed=2 * rows * lanes * itemsize + lanes * itemsize,
        ),
    )(x2d, b_row)

    return out.reshape(orig_shape)


def init_bias(input_size: int, key: jax.Array, init: str = "standard") -> jax.Array:
    """Deterministic re-implementation of BiasLayer.__init__ parameter init."""
    if init == "standard":
        stdv = 1.0 / math.sqrt(input_size)
        return jax.random.uniform(
            key, (input_size,), dtype=jnp.float32, minval=-stdv, maxval=stdv
        )
    return jnp.zeros((input_size,), dtype=jnp.float32)


if __name__ == "__main__":
    latent_size = 4  # matches the module's `input_size = latent_size = 4`

    key = jax.random.PRNGKey(0)
    k_bias, k1, k2, k3, k4 = jax.random.split(key, 5)
    bias = init_bias(latent_size, k_bias, init="standard")

    # Module-sized input (batch=8, features=4): natural-layout path, no copies.
    x_small = jax.random.normal(k1, (8, latent_size), dtype=jnp.float32)
    y_small = bias_layer_forward(x_small, bias)
    jax.block_until_ready(y_small)
    assert y_small.shape == x_small.shape and y_small.dtype == x_small.dtype
    assert jnp.allclose(y_small, x_small + bias, atol=1e-6), "f32 mismatch"

    # 3-D activation: bias broadcasts over both leading dims (natural path).
    x_3d = jax.random.normal(k2, (2, 8, latent_size), dtype=jnp.float32)
    y_3d = bias_layer_forward(x_3d, bias)
    jax.block_until_ready(y_3d)
    assert jnp.allclose(y_3d, x_3d + bias, atol=1e-6), "3-D broadcast mismatch"

    # bf16, element count a multiple of 128 -> copy-free lane-packed path.
    x_bf16 = jax.random.normal(k3, (64, latent_size), dtype=jnp.bfloat16)
    y_bf16 = bias_layer_forward(x_bf16, bias)
    jax.block_until_ready(y_bf16)
    assert y_bf16.dtype == jnp.bfloat16
    ref_bf16 = x_bf16 + bias.astype(jnp.bfloat16)
    assert jnp.allclose(
        y_bf16.astype(jnp.float32), ref_bf16.astype(jnp.float32), atol=1e-2
    ), "bf16 mismatch"

    # Larger input: lane-packed, multi-step grid with a partial last block
    # (exercises software pipelining and the "parallel" axis split).
    x_big = jax.random.normal(k4, (262176, latent_size), dtype=jnp.float32)
    y_big = bias_layer_forward(x_big, bias)
    jax.block_until_ready(y_big)
    assert jnp.allclose(y_big, x_big + bias, atol=1e-6), "multi-step grid mismatch"

    print("KERNEL_OK")
</pallas_src>

<mosaic_0001>
module attributes {stable_mosaic.version = 11 : i64} {
  func.func @_bias_add_kernel(%arg0: i32, %arg1: memref<8x4xf32, #tpu.memory_space<vmem>>, %arg2: memref<1x4xf32, #tpu.memory_space<vmem>>, %arg3: memref<8x4xf32, #tpu.memory_space<vmem>>) attributes {dimension_semantics = [#tpu.dimension_semantics<parallel>], iteration_bounds = array<i64: 1>, scalar_prefetch = 0 : i64, scratch_operands = 0 : i64, tpu.core_type = #tpu.core_type<tc>, window_params = [{transform_indices = @transform_0, window_bounds = array<i64: 8, 4>}, {pipeline_mode = #tpu.pipeline_mode<synchronous>, transform_indices = @transform_1, window_bounds = array<i64: 1, 4>}, {transform_indices = @transform_2, window_bounds = array<i64: 8, 4>}]} {
    %c0 = arith.constant 0 : index
    %c0_0 = arith.constant 0 : index
    %0 = vector.load %arg1[%c0, %c0_0] : memref<8x4xf32, #tpu.memory_space<vmem>>, vector<8x4xf32>
    %c0_1 = arith.constant 0 : index
    %c0_2 = arith.constant 0 : index
    %1 = vector.load %arg2[%c0_1, %c0_2] : memref<1x4xf32, #tpu.memory_space<vmem>>, vector<1x4xf32>
    %2 = vector.broadcast %1 : vector<1x4xf32> to vector<8x4xf32>
    %3 = arith.addf %0, %2 : vector<8x4xf32>
    %c0_3 = arith.constant 0 : index
    %c0_4 = arith.constant 0 : index
    %4 = vector.load %arg3[%c0_3, %c0_4] : memref<8x4xf32, #tpu.memory_space<vmem>>, vector<8x4xf32>
    tpu.vector_store %arg3[%c0_3, %c0_4], %3 {strides = array<i32>} : memref<8x4xf32, #tpu.memory_space<vmem>>, vector<8x4xf32>,
    return
  }
  func.func @transform_0(%arg0: i32) -> (i32, i32) {
    %c0_i32 = arith.constant 0 : i32
    %c0_i32_0 = arith.constant 0 : i32
    return %arg0, %c0_i32 : i32, i32
  }
  func.func @transform_1(%arg0: i32) -> (i32, i32) {
    %c0_i32 = arith.constant 0 : i32
    %c0_i32_0 = arith.constant 0 : i32
    %c0_i32_1 = arith.constant 0 : i32
    return %c0_i32, %c0_i32_0 : i32, i32
  }
  func.func @transform_2(%arg0: i32) -> (i32, i32) {
    %c0_i32 = arith.constant 0 : i32
    %c0_i32_0 = arith.constant 0 : i32
    return %arg0, %c0_i32 : i32, i32
  }
}

</mosaic_0001>

<bundles_post_ra>
// kernel: tpu_custom_call.1
= control target key start
LH: loop header
LB: loop body
LE: loop exit
PB: predicated region body
PF: predicated region fallthrough
CT: control target
= control target key end

     0   :  { %vm20_vm0 = vcmask 31744   ;;  %s51_s0 = inlined_call_operand.vmem [shape: f32[8,4], index: 0, kind: input, shape index: {}]   ;;  %s52_s1 = inlined_call_operand.vmem [shape: f32[1,4], index: 1, kind: input, shape index: {}]   ;;  %s53_s2 = inlined_call_operand.vmem [shape: f32[8,4], index: 2, kind: output, shape index: {}]  }
   0x1   :  { %v11_v0 = vld [vmem:[%s51_s0] sm:$0xff] }
   0x2   :  { %v26_v1 = vld [vmem:[%s52_s1] ss:$0 sm:$0xff] }
   0x3   :  { %v19_v2 = vadd.f32 %v26_v1, %v11_v0 }
   0x5   :  { %21 = vst.msk [vmem:[%s53_s2] sm:$0xff] %vm20_vm0, %v19_v2 }

</bundles_post_ra>
